<compile_context>
chip_gen: v7x
topology: tpu7x:2x2x1
jax: 0.10.0
libtpu: 0.0.40
codegen_flags: <defaults>
</compile_context>

<pallas_src>
import functools

import jax
import jax.numpy as jnp
from jax.experimental import pallas as pl
from jax.experimental.pallas import tpu as pltpu


def _round_up(x, m):
    return (x + m - 1) // m * m


# ----------------------------------------------------------------------------
# Kernel: one MXU pass per (TB, N_pad) output tile, f32 accumulation,
# bias add on the VPU, unmasked lane-dense stores (N_pad % 128 == 0).
# ----------------------------------------------------------------------------
def _fused_affine_kernel(x_ref, w_ref, b_ref, o_ref):
    o_ref[...] = (
        jnp.dot(x_ref[...], w_ref[...], preferred_element_type=jnp.float32)
        + b_ref[...]
    ).astype(o_ref.dtype)


def _fold_params(params, compute_dtype):
    """Compose proj chain + both heads into a single (D_in, N_pad) affine map."""
    # Fuse the two heads: one (d_hidden, 2*d_out) weight, one (1, 2*d_out) bias.
    w = jnp.concatenate([params["w_mean"], params["w_logvar"]], axis=1)
    b = jnp.concatenate([params["b_mean"], params["b_logvar"]], axis=1)
    # Fold the identity-activation proj layers from the back:
    # (h @ Wi + bi) composed with (w, b) == h @ (Wi @ w) + (bi @ w + b).
    for wi, bi in reversed(params["proj"]):
        b = bi @ w + b
        w = wi @ w
    d_out2 = w.shape[1]
    n_pad = _round_up(d_out2, 128)          # lane-dense output -> unmasked vst
    w = jnp.pad(w, ((0, 0), (0, n_pad - d_out2)))
    b = jnp.pad(b, ((0, 0), (0, n_pad - d_out2)))
    return w.astype(compute_dtype), b.astype(jnp.float32)


@functools.partial(jax.jit, static_argnames=("compute_dtype", "block_b"))
def local_st_encoder_forward(x, params, *, compute_dtype=jnp.bfloat16,
                             block_b=512):
    """x: (B, time_len, num_neighbors, d_in).  Returns (mu, log_var) in f32."""
    B = x.shape[0]
    d_out = params["w_mean"].shape[1]

    x_flat = x.reshape(B, -1)               # == torch.flatten(x, 1, -1)
    d_in = x_flat.shape[1]

    w_eff, b_eff = _fold_params(params, compute_dtype)
    n_pad = w_eff.shape[1]

    # Batch tiling: pad B so every grid step is a full (tb, d_in) tile.
    tb = min(block_b, _round_up(B, 8))
    b_pad = _round_up(B, tb)
    x_flat = jnp.pad(x_flat, ((0, b_pad - B), (0, 0))).astype(compute_dtype)

    out = pl.pallas_call(
        _fused_affine_kernel,
        out_shape=jax.ShapeDtypeStruct((b_pad, n_pad), jnp.float32),
        grid=(b_pad // tb,),
        in_specs=[
            pl.BlockSpec((tb, d_in), lambda i: (i, 0)),      # x: streamed tiles
            pl.BlockSpec((d_in, n_pad), lambda i: (0, 0)),   # weight: resident
            pl.BlockSpec((1, n_pad), lambda i: (0, 0)),      # bias: resident
        ],
        out_specs=pl.BlockSpec((tb, n_pad), lambda i: (i, 0)),
        compiler_params=pltpu.CompilerParams(
            # B-tiles are independent -> shard across both TCs on v7x.
            dimension_semantics=("parallel",),
            # Sized against v7x's 64 MiB physical VMEM (also fine on v5e/v6e).
            vmem_limit_bytes=32 * 1024 * 1024,
        ),
    )(x_flat, w_eff, b_eff)

    mu = out[:B, :d_out]
    log_var = out[:B, d_out:2 * d_out]
    return mu, log_var


# ----------------------------------------------------------------------------
# Deterministic parameter init (shapes follow the module __init__) + reference.
# Weights are stored (in_features, out_features); semantics match nn.Linear.
# ----------------------------------------------------------------------------
def init_params(key, num_neighbors, d_in, d_out, time_len, num_layers):
    dim_in = d_in * num_neighbors * time_len
    d_hidden = d_out * 2

    def linear(key, fan_in, fan_out):
        kw, kb = jax.random.split(key)
        scale = 1.0 / jnp.sqrt(fan_in)
        w = jax.random.uniform(kw, (fan_in, fan_out), jnp.float32, -scale, scale)
        b = jax.random.uniform(kb, (1, fan_out), jnp.float32, -scale, scale)
        return w, b

    keys = jax.random.split(key, num_layers + 2)
    proj = []
    fan_in = dim_in
    for i in range(num_layers):
        proj.append(linear(keys[i], fan_in, d_hidden))
        fan_in = d_hidden
    w_mean, b_mean = linear(keys[num_layers], d_hidden, d_out)
    w_logvar, b_logvar = linear(keys[num_layers + 1], d_hidden, d_out)
    return {"proj": proj, "w_mean": w_mean, "b_mean": b_mean,
            "w_logvar": w_logvar, "b_logvar": b_logvar}


def reference_forward(x, params):
    """Plain-JAX f32 reference of the unfused forward pass."""
    h = x.reshape(x.shape[0], -1)
    for w, b in params["proj"]:
        h = h @ w + b
    mu = h @ params["w_mean"] + params["b_mean"]
    log_var = h @ params["w_logvar"] + params["b_logvar"]
    return mu, log_var


if __name__ == "__main__":
    # Small shapes consistent with the module.
    B = 16
    num_neighbors = 4
    d_in = 4
    d_out = 32
    time_len = 3
    num_layers = 3

    key = jax.random.PRNGKey(0)
    kx, kp = jax.random.split(key)
    x = jax.random.normal(kx, (B, time_len, num_neighbors, d_in), jnp.float32)
    params = init_params(kp, num_neighbors, d_in, d_out, time_len, num_layers)

    mu_ref, lv_ref = reference_forward(x, params)

    # f32 path: tight tolerance against the unfused reference.
    mu32, lv32 = jax.block_until_ready(
        local_st_encoder_forward(x, params, compute_dtype=jnp.float32))
    assert mu32.shape == (B, d_out) and lv32.shape == (B, d_out)
    assert jnp.allclose(mu32, mu_ref, atol=1e-4, rtol=1e-4)
    assert jnp.allclose(lv32, lv_ref, atol=1e-4, rtol=1e-4)

    # bf16 path (default): bandwidth-optimal operands, f32 MXU accumulation.
    mu16, lv16 = jax.block_until_ready(local_st_encoder_forward(x, params))
    assert mu16.shape == (B, d_out) and lv16.shape == (B, d_out)
    assert jnp.allclose(mu16, mu_ref, atol=3e-2, rtol=3e-2)
    assert jnp.allclose(lv16, lv_ref, atol=3e-2, rtol=3e-2)

    print("KERNEL_OK")
</pallas_src>

<mosaic_0001>
module attributes {stable_mosaic.version = 11 : i64} {
  func.func @_fused_affine_kernel(%arg0: i32, %arg1: memref<16x48xf32, #tpu.memory_space<vmem>>, %arg2: memref<48x128xf32, #tpu.memory_space<vmem>>, %arg3: memref<1x128xf32, #tpu.memory_space<vmem>>, %arg4: memref<16x128xf32, #tpu.memory_space<vmem>>) attributes {dimension_semantics = [#tpu.dimension_semantics<parallel>], iteration_bounds = array<i64: 1>, scalar_prefetch = 0 : i64, scratch_operands = 0 : i64, tpu.core_type = #tpu.core_type<tc>, window_params = [{transform_indices = @transform_0, window_bounds = array<i64: 16, 48>}, {pipeline_mode = #tpu.pipeline_mode<synchronous>, transform_indices = @transform_1, window_bounds = array<i64: 48, 128>}, {pipeline_mode = #tpu.pipeline_mode<synchronous>, transform_indices = @transform_2, window_bounds = array<i64: 1, 128>}, {transform_indices = @transform_3, window_bounds = array<i64: 16, 128>}]} {
    %c0 = arith.constant 0 : index
    %c0_0 = arith.constant 0 : index
    %0 = vector.load %arg1[%c0, %c0_0] : memref<16x48xf32, #tpu.memory_space<vmem>>, vector<16x48xf32>
    %c0_1 = arith.constant 0 : index
    %c0_2 = arith.constant 0 : index
    %1 = vector.load %arg2[%c0_1, %c0_2] : memref<48x128xf32, #tpu.memory_space<vmem>>, vector<48x128xf32>
    %cst = arith.constant dense<0.000000e+00> : vector<16x128xf32>
    %2 = tpu.matmul %0, %1, %cst {dimension_numbers = #tpu.dot_dimension_numbers<[1], [0], [0], [1], [0, 0, 1, 1], [], []>} : vector<16x48xf32>, vector<48x128xf32>, vector<16x128xf32> -> vector<16x128xf32>
    %c0_3 = arith.constant 0 : index
    %c0_4 = arith.constant 0 : index
    %3 = vector.load %arg3[%c0_3, %c0_4] : memref<1x128xf32, #tpu.memory_space<vmem>>, vector<1x128xf32>
    %4 = vector.broadcast %3 : vector<1x128xf32> to vector<16x128xf32>
    %5 = arith.addf %2, %4 : vector<16x128xf32>
    %c0_5 = arith.constant 0 : index
    %c0_6 = arith.constant 0 : index
    %6 = vector.load %arg4[%c0_5, %c0_6] : memref<16x128xf32, #tpu.memory_space<vmem>>, vector<16x128xf32>
    tpu.vector_store %arg4[%c0_5, %c0_6], %5 {strides = array<i32>} : memref<16x128xf32, #tpu.memory_space<vmem>>, vector<16x128xf32>,
    return
  }
  func.func @transform_0(%arg0: i32) -> (i32, i32) {
    %c0_i32 = arith.constant 0 : i32
    %c0_i32_0 = arith.constant 0 : i32
    return %arg0, %c0_i32 : i32, i32
  }
  func.func @transform_1(%arg0: i32) -> (i32, i32) {
    %c0_i32 = arith.constant 0 : i32
    %c0_i32_0 = arith.constant 0 : i32
    %c0_i32_1 = arith.constant 0 : i32
    return %c0_i32, %c0_i32_0 : i32, i32
  }
  func.func @transform_2(%arg0: i32) -> (i32, i32) {
    %c0_i32 = arith.constant 0 : i32
    %c0_i32_0 = arith.constant 0 : i32
    %c0_i32_1 = arith.constant 0 : i32
    return %c0_i32, %c0_i32_0 : i32, i32
  }
  func.func @transform_3(%arg0: i32) -> (i32, i32) {
    %c0_i32 = arith.constant 0 : i32
    %c0_i32_0 = arith.constant 0 : i32
    return %arg0, %c0_i32 : i32, i32
  }
}

</mosaic_0001>

<bundles_post_ra>
// kernel: local_st_encoder_forward.1
= control target key start
LH: loop header
LB: loop body
LE: loop exit
PB: predicated region body
PF: predicated region fallthrough
CT: control target
= control target key end

     0   :  { %vm29_vm0 = vcmask 392192   ;;  %s210_s1 = inlined_call_operand.vmem [shape: f32[48,128], index: 1, kind: input, shape index: {}]   ;;  %s211_s0 = inlined_call_operand.vmem [shape: f32[16,48], index: 0, kind: input, shape index: {}]   ;;  %s212_s2 = inlined_call_operand.vmem [shape: f32[1,128], index: 2, kind: input, shape index: {}]   ;;  %s213_s3 = inlined_call_operand.vmem [shape: f32[16,128], index: 3, kind: output, shape index: {}]  }
   0x1   :  { %v16_v0 = vld [vmem:[%s210_s1] sm:$0xff]  ;;  %v17_v1 = vld [vmem:[%s210_s1 + $0x8] sm:$0xff]  ;;  %v18_v2 = vld [vmem:[%s210_s1 + $0x10] sm:$0xff] }
   0x2   :  { %v143_v3 = vpack.c.bf16 %v17_v1, %v16_v0  ;;  %v19_v4 = vld [vmem:[%s210_s1 + $0x18] sm:$0xff]  ;;  %v20_v6 = vld [vmem:[%s210_s1 + $0x20] sm:$0xff]  ;;  %v21_v7 = vld [vmem:[%s210_s1 + $0x28] sm:$0xff] }
   0x3   :  { %v147_v5 = vpack.c.bf16 %v19_v4, %v18_v2  ;;  %v14_v8 = vld [vmem:[%s211_s0] sm:$0xff]  ;;  %v151_v9 = vpack.c.bf16 %v21_v7, %v20_v6  ;;  %v15_v10 = vld [vmem:[%s211_s0 + $0x8] sm:$0xff] }
   0x4   :  { %144 = vmatprep.subr.bf16.mxu0 %v143_v3  ;;  %140 = vmatprep.mubr.msk.f32.mxu0 %vm29_vm0, %v14_v8  ;;  %v117_v11 = vld [vmem:[%s212_s2] ss:$0 sm:$0xff] }
   0x5   :  { %146 = vmatpush3.bf16.msra.mxu0 %v143_v3 }
   0x6   :  { %148 = vmatprep.subr.bf16.mxu0 %v147_v5 }
   0x9   :  { %150 = vmatpush3.bf16.msra.mxu0 %v147_v5 }
   0xa   :  { %152 = vmatprep.subr.bf16.mxu0 %v151_v9 }
   0xd   :  { %154 = vmatpush3.bf16.msra.mxu0 %v151_v9 }
  0x10   :  { %141 = vmatmul.mubr.msk.f32.vlgmr.msra.gmra.mrb[0].mxu0 %vm29_vm0, %v15_v10 }
  0xe3   :  { %v142_v12 = vpop.f32.mrb[0].mxu0 }
  0xe4   :  { %v108_v13 = vadd.f32 %v142_v12, %v117_v11  ;;  %v102_v14 = vpop.f32.mrb[1].mxu0 }
  0xe5   :  { %v103_v15 = vadd.f32 %v117_v11, %v102_v14 }
  0xe6   :  { %112 = vst [vmem:[%s213_s3 + $0x8] sm:$0xff] %v108_v13 }
  0xe7   :  { %111 = vst [vmem:[%s213_s3] sm:$0xff] %v103_v15 }

</bundles_post_ra>
